<compile_context>
chip_gen: v7x
topology: tpu7x:2x2x1
jax: 0.10.0
libtpu: 0.0.40
codegen_flags: <defaults>
</compile_context>

<pallas_src>
import jax
import jax.numpy as jnp
from jax.experimental import pallas as pl
from jax.experimental.pallas import tpu as pltpu


# --------------------------------------------------------------------------
# Kernel: B images per grid step, activations as (strip, Rh*W*C) rows.
# --------------------------------------------------------------------------
def _basic_block_kernel(x_ref, wb1_ref, s1_ref, b1_ref, wb2_ref, s2_ref, b2_ref,
                        out_ref, xs_ref, ys_ref):
    B, S, L = x_ref.shape              # B images, S strips/image, L = Rh*W*Cin
    Lo = out_ref.shape[2]              # Rh*W*Cout
    M = B * S                          # matmul M (rows)

    zrow_i = jnp.zeros((1, L), jnp.float32)
    zrow_o = jnp.zeros((1, Lo), jnp.float32)

    x = x_ref[...].reshape(M, L)       # f32, also reused for the residual add

    # ---- stage conv1 LHS: 3 lane slabs = [strip above | strip | strip below].
    #      The per-image boundary rows of the shifted slabs are zeroed: this is
    #      both the H-direction halo and the cross-image isolation.
    xs_ref[:, L:2 * L] = x
    xs_ref[1:M, 0:L] = x[0:M - 1]
    xs_ref[0:M - 1, 2 * L:3 * L] = x[1:M]
    for b in range(B):
        xs_ref[b * S:b * S + 1, 0:L] = zrow_i                      # no strip above
        xs_ref[(b + 1) * S - 1:(b + 1) * S, 2 * L:3 * L] = zrow_i  # no strip below

    # ---- conv1: single K=3L matmul (bf16 in, f32 accumulate) + bn1 + relu ----
    h1 = jnp.dot(xs_ref[...].astype(jnp.bfloat16), wb1_ref[...],
                 preferred_element_type=jnp.float32)
    y1 = jnp.maximum(h1 * s1_ref[...] + b1_ref[...], 0.0)

    # ---- stage conv2 LHS ----
    ys_ref[:, Lo:2 * Lo] = y1
    ys_ref[1:M, 0:Lo] = y1[0:M - 1]
    ys_ref[0:M - 1, 2 * Lo:3 * Lo] = y1[1:M]
    for b in range(B):
        ys_ref[b * S:b * S + 1, 0:Lo] = zrow_o
        ys_ref[(b + 1) * S - 1:(b + 1) * S, 2 * Lo:3 * Lo] = zrow_o

    # ---- conv2 + bn2 + residual add + relu (Cin == Cout: layouts coincide) ----
    h2 = jnp.dot(ys_ref[...].astype(jnp.bfloat16), wb2_ref[...],
                 preferred_element_type=jnp.float32)
    out = jnp.maximum(h2 * s2_ref[...] + b2_ref[...] + x, 0.0)
    out_ref[...] = out.reshape(B, S, Lo)


# --------------------------------------------------------------------------
# Wrapper-side weight prep: fold all 3x3 taps (and SAME padding inside a strip
# / along W) into banded matrices over strips of Rh rows, stacked along K for
# the 3 strip taps (above / same / below).
#   wb[(ds, ri, wi, ci), (ro, wo, co)] = w[ds*Rh + ri - ro + 1, wi - wo + 1, ci, co]
# so out_strip[s] = concat(x_strip[s-1], x_strip[s], x_strip[s+1]) @ wb.
# --------------------------------------------------------------------------
def _strip_banded_weights(w, W, Rh):
    """w: (3, 3, Cin, Cout) HWIO  ->  (3*Rh*W*Cin, Rh*W*Cout)."""
    kh, kw, Cin, Cout = w.shape
    ds = jnp.arange(3) - 1                      # strip taps: -1, 0, +1
    ri = jnp.arange(Rh)
    ro = jnp.arange(Rh)
    wi = jnp.arange(W)
    wo = jnp.arange(W)
    dy = ds[:, None, None] * Rh + ri[None, :, None] - ro[None, None, :] + kh // 2
    dx = wi[:, None] - wo[None, :] + kw // 2
    vy = (dy >= 0) & (dy < kh)
    vx = (dx >= 0) & (dx < kw)
    dyc = jnp.clip(dy, 0, kh - 1)
    dxc = jnp.clip(dx, 0, kw - 1)
    # (3, Rh, W, Rh, W, Cin, Cout); zero where the tap falls outside the 3x3 window
    wb = w[dyc[:, :, None, :, None], dxc[None, None, :, None, :]]
    valid = vy[:, :, None, :, None] & vx[None, None, :, None, :]
    wb = jnp.where(valid[..., None, None], wb, 0.0)
    wb = jnp.transpose(wb, (0, 1, 2, 5, 3, 4, 6))   # (ds, ri, wi, ci, ro, wo, co)
    return wb.reshape(3 * Rh * W * Cin, Rh * W * Cout)


def basic_block_forward(x_nchw, params, *, block_n=None):
    """BasicBlock forward.  x_nchw: (N, C, H, W) f32 (PyTorch convention).

    params = (w1, s1, b1, w2, s2, b2): conv weights in HWIO (3,3,Cin,Cout) and
    folded eval-mode BN scale/bias of shape (1, C).
    """
    w1, s1, b1, w2, s2, b2 = params
    N, Cin, H, W = x_nchw.shape
    Cout = w1.shape[-1]
    if Cin != Cout:
        raise NotImplementedError(
            "stride>1 / downsample branch not implemented (requires Cin == Cout)")

    # ---- strip height Rh: smallest Rh with H % Rh == 0 and Rh*W*C % 128 == 0
    #      so activations / output stores are lane-dense (>= 128 lanes). ----
    Rh = 1
    if (W * Cin) % 128 != 0:
        for r in (2, 4, 8, 16):
            if H % r == 0 and (r * W * Cin) % 128 == 0:
                Rh = r
                break
    S = H // Rh
    L = Rh * W * Cin
    Lo = Rh * W * Cout

    # ---- images per grid step: fatten MXU M (target ~256 rows) while keeping
    #      at least 2 parallel grid steps when N allows (v7x second TC). ----
    if block_n is None:
        block_n = 1
        for b in range(1, N + 1):
            if N % b != 0 or b * S > 256:
                continue
            if N >= 2 and N // b < 2:
                continue
            block_n = b
    B = block_n
    assert N % B == 0, "block_n must divide the batch size"

    # NCHW -> strip-row, lane-dense layout (N, S, Rh*W*C), channels minor.
    x = jnp.transpose(x_nchw, (0, 2, 3, 1)).reshape(N, S, L)

    # Banded conv weights (bf16 for the MXU) and BN params broadcast over pixels.
    wb1 = _strip_banded_weights(w1, W, Rh).astype(jnp.bfloat16)
    wb2 = _strip_banded_weights(w2, W, Rh).astype(jnp.bfloat16)
    s1r, b1r = jnp.tile(s1, (1, Rh * W)), jnp.tile(b1, (1, Rh * W))
    s2r, b2r = jnp.tile(s2, (1, Rh * W)), jnp.tile(b2, (1, Rh * W))

    # VMEM budget: double-buffered I/O blocks + resident weights + staging scratch.
    est = (2 * (B * S * L + B * S * Lo + 4 * Lo) * 4
           + 2 * (3 * L * Lo + 3 * Lo * Lo) * 2
           + (B * S * 3 * L + B * S * 3 * Lo) * 4)
    vmem_limit = int(min(64 * 2 ** 20, max(4 * 2 ** 20, 4 * est)))

    grid_spec = pltpu.PrefetchScalarGridSpec(
        num_scalar_prefetch=0,
        grid=(N // B,),                                   # B images per grid step
        in_specs=[
            pl.BlockSpec((B, S, L), lambda n: (n, 0, 0)),
            pl.BlockSpec((3 * L, Lo), lambda n: (0, 0)),  # resident weights
            pl.BlockSpec((1, Lo), lambda n: (0, 0)),
            pl.BlockSpec((1, Lo), lambda n: (0, 0)),
            pl.BlockSpec((3 * Lo, Lo), lambda n: (0, 0)),
            pl.BlockSpec((1, Lo), lambda n: (0, 0)),
            pl.BlockSpec((1, Lo), lambda n: (0, 0)),
        ],
        out_specs=pl.BlockSpec((B, S, Lo), lambda n: (n, 0, 0)),
        scratch_shapes=[
            pltpu.VMEM((B * S, 3 * L), jnp.float32),      # conv1 LHS slabs
            pltpu.VMEM((B * S, 3 * Lo), jnp.float32),     # conv2 LHS slabs
        ],
    )
    out = pl.pallas_call(
        _basic_block_kernel,
        out_shape=jax.ShapeDtypeStruct((N, S, Lo), jnp.float32),
        grid_spec=grid_spec,
        compiler_params=pltpu.CompilerParams(
            dimension_semantics=("parallel",),            # batch axis -> megacore
            vmem_limit_bytes=vmem_limit,
        ),
    )(x, wb1, s1r, b1r, wb2, s2r, b2r)

    return jnp.transpose(out.reshape(N, H, W, Cout), (0, 3, 1, 2))  # -> NCHW


# --------------------------------------------------------------------------
# Pure-JAX reference matching the kernel's numerics (bf16 conv inputs,
# f32 accumulation), for correctness checking.
# --------------------------------------------------------------------------
def _conv3x3_bf16_ref(x, w):
    N, H, W, Cin = x.shape
    xp = jnp.pad(x, ((0, 0), (1, 1), (1, 1), (0, 0)))
    out = jnp.zeros((N, H, W, w.shape[-1]), jnp.float32)
    for dy in range(3):
        for dx in range(3):
            out = out + jnp.einsum(
                "nhwc,cd->nhwd",
                xp[:, dy:dy + H, dx:dx + W, :].astype(jnp.bfloat16),
                w[dy, dx].astype(jnp.bfloat16),
                preferred_element_type=jnp.float32)
    return out


def _ref_forward(x_nchw, params):
    w1, s1, b1, w2, s2, b2 = params
    x = jnp.transpose(x_nchw, (0, 2, 3, 1))
    y = jnp.maximum(_conv3x3_bf16_ref(x, w1) * s1 + b1, 0.0)
    y = _conv3x3_bf16_ref(y, w2) * s2 + b2
    y = jnp.maximum(y + x, 0.0)
    return jnp.transpose(y, (0, 3, 1, 2))


if __name__ == "__main__":
    # inplanes == planes == 4, stride=1, downsample=None (module defaults).
    N, C, H, W = 2, 4, 16, 16
    key = jax.random.PRNGKey(0)
    ks = jax.random.split(key, 11)

    x = jax.random.normal(ks[0], (N, C, H, W), jnp.float32)

    # conv weights in HWIO layout: (3, 3, Cin, Cout)
    w1 = 0.1 * jax.random.normal(ks[1], (3, 3, C, C), jnp.float32)
    w2 = 0.1 * jax.random.normal(ks[2], (3, 3, C, C), jnp.float32)

    eps = 1e-5

    def bn_fold(kg, kb, km, kv):
        gamma = 1.0 + 0.1 * jax.random.normal(kg, (1, C), jnp.float32)
        beta = 0.1 * jax.random.normal(kb, (1, C), jnp.float32)
        mean = 0.1 * jax.random.normal(km, (1, C), jnp.float32)
        var = 0.5 + jax.random.uniform(kv, (1, C), jnp.float32)
        scale = gamma * jax.lax.rsqrt(var + eps)
        bias = beta - mean * scale
        return scale, bias

    s1, b1 = bn_fold(ks[3], ks[4], ks[5], ks[6])
    s2, b2 = bn_fold(ks[7], ks[8], ks[9], ks[10])
    params = (w1, s1, b1, w2, s2, b2)

    fwd = jax.jit(basic_block_forward)
    out = jax.block_until_ready(fwd(x, params))
    ref = jax.block_until_ready(_ref_forward(x, params))

    assert out.shape == (N, C, H, W)
    assert jnp.allclose(out, ref, atol=2e-3, rtol=2e-3), "mismatch vs JAX reference"

    print("KERNEL_OK")
</pallas_src>

<mosaic_0001>
module attributes {stable_mosaic.version = 11 : i64} {
  func.func @_basic_block_kernel(%arg0: i32, %arg1: memref<1x8x128xf32, #tpu.memory_space<vmem>>, %arg2: memref<384x128xbf16, #tpu.memory_space<vmem>>, %arg3: memref<1x128xf32, #tpu.memory_space<vmem>>, %arg4: memref<1x128xf32, #tpu.memory_space<vmem>>, %arg5: memref<384x128xbf16, #tpu.memory_space<vmem>>, %arg6: memref<1x128xf32, #tpu.memory_space<vmem>>, %arg7: memref<1x128xf32, #tpu.memory_space<vmem>>, %arg8: memref<1x8x128xf32, #tpu.memory_space<vmem>>, %arg9: memref<8x384xf32, #tpu.memory_space<vmem>>, %arg10: memref<8x384xf32, #tpu.memory_space<vmem>>) attributes {dimension_semantics = [#tpu.dimension_semantics<parallel>], iteration_bounds = array<i64: 2>, scalar_prefetch = 0 : i64, scratch_operands = 2 : i64, tpu.core_type = #tpu.core_type<tc>, window_params = [{transform_indices = @transform_0, window_bounds = array<i64: 1, 8, 128>}, {pipeline_mode = #tpu.pipeline_mode<synchronous>, transform_indices = @transform_1, window_bounds = array<i64: 384, 128>}, {pipeline_mode = #tpu.pipeline_mode<synchronous>, transform_indices = @transform_2, window_bounds = array<i64: 1, 128>}, {pipeline_mode = #tpu.pipeline_mode<synchronous>, transform_indices = @transform_3, window_bounds = array<i64: 1, 128>}, {pipeline_mode = #tpu.pipeline_mode<synchronous>, transform_indices = @transform_4, window_bounds = array<i64: 384, 128>}, {pipeline_mode = #tpu.pipeline_mode<synchronous>, transform_indices = @transform_5, window_bounds = array<i64: 1, 128>}, {pipeline_mode = #tpu.pipeline_mode<synchronous>, transform_indices = @transform_6, window_bounds = array<i64: 1, 128>}, {transform_indices = @transform_7, window_bounds = array<i64: 1, 8, 128>}]} {
    %cst = arith.constant 0.000000e+00 : f32
    %0 = vector.broadcast %cst : f32 to vector<1x128xf32>
    %cst_0 = arith.constant 0.000000e+00 : f32
    %1 = vector.broadcast %cst_0 : f32 to vector<1x128xf32>
    %c0 = arith.constant 0 : index
    %c0_1 = arith.constant 0 : index
    %c0_2 = arith.constant 0 : index
    %2 = vector.load %arg1[%c0, %c0_1, %c0_2] : memref<1x8x128xf32, #tpu.memory_space<vmem>>, vector<1x8x128xf32>
    %3 = vector.shape_cast %2 : vector<1x8x128xf32> to vector<8x128xf32>
    %c0_3 = arith.constant 0 : index
    %c128 = arith.constant 128 : index
    %4 = vector.load %arg9[%c0_3, %c128] : memref<8x384xf32, #tpu.memory_space<vmem>>, vector<8x128xf32>
    tpu.vector_store %arg9[%c0_3, %c128], %3 {strides = array<i32>} : memref<8x384xf32, #tpu.memory_space<vmem>>, vector<8x128xf32>,
    %5 = vector.extract_strided_slice %3 {offsets = [0, 0], sizes = [7, 128], strides = [1, 1]} : vector<8x128xf32> to vector<7x128xf32>
    %c1 = arith.constant 1 : index
    %c0_4 = arith.constant 0 : index
    %6 = vector.load %arg9[%c1, %c0_4] : memref<8x384xf32, #tpu.memory_space<vmem>>, vector<7x128xf32>
    tpu.vector_store %arg9[%c1, %c0_4], %5 {strides = array<i32>} : memref<8x384xf32, #tpu.memory_space<vmem>>, vector<7x128xf32>,
    %7 = vector.extract_strided_slice %3 {offsets = [1, 0], sizes = [7, 128], strides = [1, 1]} : vector<8x128xf32> to vector<7x128xf32>
    %c0_5 = arith.constant 0 : index
    %c256 = arith.constant 256 : index
    %8 = vector.load %arg9[%c0_5, %c256] : memref<8x384xf32, #tpu.memory_space<vmem>>, vector<7x128xf32>
    tpu.vector_store %arg9[%c0_5, %c256], %7 {strides = array<i32>} : memref<8x384xf32, #tpu.memory_space<vmem>>, vector<7x128xf32>,
    %c0_6 = arith.constant 0 : index
    %c0_7 = arith.constant 0 : index
    %9 = vector.load %arg9[%c0_6, %c0_7] : memref<8x384xf32, #tpu.memory_space<vmem>>, vector<1x128xf32>
    tpu.vector_store %arg9[%c0_6, %c0_7], %0 {strides = array<i32>} : memref<8x384xf32, #tpu.memory_space<vmem>>, vector<1x128xf32>,
    %c7 = arith.constant 7 : index
    %c256_8 = arith.constant 256 : index
    %10 = vector.load %arg9[%c7, %c256_8] : memref<8x384xf32, #tpu.memory_space<vmem>>, vector<1x128xf32>
    tpu.vector_store %arg9[%c7, %c256_8], %0 {strides = array<i32>} : memref<8x384xf32, #tpu.memory_space<vmem>>, vector<1x128xf32>,
    %c0_9 = arith.constant 0 : index
    %c0_10 = arith.constant 0 : index
    %11 = vector.load %arg9[%c0_9, %c0_10] : memref<8x384xf32, #tpu.memory_space<vmem>>, vector<8x384xf32>
    %12 = arith.truncf %11 : vector<8x384xf32> to vector<8x384xbf16>
    %c0_11 = arith.constant 0 : index
    %c0_12 = arith.constant 0 : index
    %13 = vector.load %arg2[%c0_11, %c0_12] : memref<384x128xbf16, #tpu.memory_space<vmem>>, vector<384x128xbf16>
    %cst_13 = arith.constant dense<0.000000e+00> : vector<8x128xf32>
    %14 = tpu.matmul %12, %13, %cst_13 {dimension_numbers = #tpu.dot_dimension_numbers<[1], [0], [0], [1], [0, 0, 1, 1], [], []>} : vector<8x384xbf16>, vector<384x128xbf16>, vector<8x128xf32> -> vector<8x128xf32>
    %c0_14 = arith.constant 0 : index
    %c0_15 = arith.constant 0 : index
    %15 = vector.load %arg3[%c0_14, %c0_15] : memref<1x128xf32, #tpu.memory_space<vmem>>, vector<1x128xf32>
    %16 = vector.broadcast %15 : vector<1x128xf32> to vector<8x128xf32>
    %17 = arith.mulf %14, %16 : vector<8x128xf32>
    %c0_16 = arith.constant 0 : index
    %c0_17 = arith.constant 0 : index
    %18 = vector.load %arg4[%c0_16, %c0_17] : memref<1x128xf32, #tpu.memory_space<vmem>>, vector<1x128xf32>
    %19 = vector.broadcast %18 : vector<1x128xf32> to vector<8x128xf32>
    %20 = arith.addf %17, %19 : vector<8x128xf32>
    %cst_18 = arith.constant 0.000000e+00 : f32
    %21 = vector.broadcast %cst_18 : f32 to vector<8x128xf32>
    %22 = arith.maximumf %20, %21 : vector<8x128xf32>
    %c0_19 = arith.constant 0 : index
    %c128_20 = arith.constant 128 : index
    %23 = vector.load %arg10[%c0_19, %c128_20] : memref<8x384xf32, #tpu.memory_space<vmem>>, vector<8x128xf32>
    tpu.vector_store %arg10[%c0_19, %c128_20], %22 {strides = array<i32>} : memref<8x384xf32, #tpu.memory_space<vmem>>, vector<8x128xf32>,
    %24 = vector.extract_strided_slice %22 {offsets = [0, 0], sizes = [7, 128], strides = [1, 1]} : vector<8x128xf32> to vector<7x128xf32>
    %c1_21 = arith.constant 1 : index
    %c0_22 = arith.constant 0 : index
    %25 = vector.load %arg10[%c1_21, %c0_22] : memref<8x384xf32, #tpu.memory_space<vmem>>, vector<7x128xf32>
    tpu.vector_store %arg10[%c1_21, %c0_22], %24 {strides = array<i32>} : memref<8x384xf32, #tpu.memory_space<vmem>>, vector<7x128xf32>,
    %26 = vector.extract_strided_slice %22 {offsets = [1, 0], sizes = [7, 128], strides = [1, 1]} : vector<8x128xf32> to vector<7x128xf32>
    %c0_23 = arith.constant 0 : index
    %c256_24 = arith.constant 256 : index
    %27 = vector.load %arg10[%c0_23, %c256_24] : memref<8x384xf32, #tpu.memory_space<vmem>>, vector<7x128xf32>
    tpu.vector_store %arg10[%c0_23, %c256_24], %26 {strides = array<i32>} : memref<8x384xf32, #tpu.memory_space<vmem>>, vector<7x128xf32>,
    %c0_25 = arith.constant 0 : index
    %c0_26 = arith.constant 0 : index
    %28 = vector.load %arg10[%c0_25, %c0_26] : memref<8x384xf32, #tpu.memory_space<vmem>>, vector<1x128xf32>
    tpu.vector_store %arg10[%c0_25, %c0_26], %1 {strides = array<i32>} : memref<8x384xf32, #tpu.memory_space<vmem>>, vector<1x128xf32>,
    %c7_27 = arith.constant 7 : index
    %c256_28 = arith.constant 256 : index
    %29 = vector.load %arg10[%c7_27, %c256_28] : memref<8x384xf32, #tpu.memory_space<vmem>>, vector<1x128xf32>
    tpu.vector_store %arg10[%c7_27, %c256_28], %1 {strides = array<i32>} : memref<8x384xf32, #tpu.memory_space<vmem>>, vector<1x128xf32>,
    %c0_29 = arith.constant 0 : index
    %c0_30 = arith.constant 0 : index
    %30 = vector.load %arg10[%c0_29, %c0_30] : memref<8x384xf32, #tpu.memory_space<vmem>>, vector<8x384xf32>
    %31 = arith.truncf %30 : vector<8x384xf32> to vector<8x384xbf16>
    %c0_31 = arith.constant 0 : index
    %c0_32 = arith.constant 0 : index
    %32 = vector.load %arg5[%c0_31, %c0_32] : memref<384x128xbf16, #tpu.memory_space<vmem>>, vector<384x128xbf16>
    %cst_33 = arith.constant dense<0.000000e+00> : vector<8x128xf32>
    %33 = tpu.matmul %31, %32, %cst_33 {dimension_numbers = #tpu.dot_dimension_numbers<[1], [0], [0], [1], [0, 0, 1, 1], [], []>} : vector<8x384xbf16>, vector<384x128xbf16>, vector<8x128xf32> -> vector<8x128xf32>
    %c0_34 = arith.constant 0 : index
    %c0_35 = arith.constant 0 : index
    %34 = vector.load %arg6[%c0_34, %c0_35] : memref<1x128xf32, #tpu.memory_space<vmem>>, vector<1x128xf32>
    %35 = vector.broadcast %34 : vector<1x128xf32> to vector<8x128xf32>
    %36 = arith.mulf %33, %35 : vector<8x128xf32>
    %c0_36 = arith.constant 0 : index
    %c0_37 = arith.constant 0 : index
    %37 = vector.load %arg7[%c0_36, %c0_37] : memref<1x128xf32, #tpu.memory_space<vmem>>, vector<1x128xf32>
    %38 = vector.broadcast %37 : vector<1x128xf32> to vector<8x128xf32>
    %39 = arith.addf %36, %38 : vector<8x128xf32>
    %40 = arith.addf %39, %3 : vector<8x128xf32>
    %cst_38 = arith.constant 0.000000e+00 : f32
    %41 = vector.broadcast %cst_38 : f32 to vector<8x128xf32>
    %42 = arith.maximumf %40, %41 : vector<8x128xf32>
    %43 = vector.shape_cast %42 : vector<8x128xf32> to vector<1x8x128xf32>
    %c0_39 = arith.constant 0 : index
    %c0_40 = arith.constant 0 : index
    %c0_41 = arith.constant 0 : index
    %44 = vector.load %arg8[%c0_39, %c0_40, %c0_41] : memref<1x8x128xf32, #tpu.memory_space<vmem>>, vector<1x8x128xf32>
    tpu.vector_store %arg8[%c0_39, %c0_40, %c0_41], %43 {strides = array<i32>} : memref<1x8x128xf32, #tpu.memory_space<vmem>>, vector<1x8x128xf32>,
    return
  }
  func.func @transform_0(%arg0: i32) -> (i32, i32, i32) {
    %c0_i32 = arith.constant 0 : i32
    %c0_i32_0 = arith.constant 0 : i32
    %c0_i32_1 = arith.constant 0 : i32
    return %arg0, %c0_i32, %c0_i32_0 : i32, i32, i32
  }
  func.func @transform_1(%arg0: i32) -> (i32, i32) {
    %c0_i32 = arith.constant 0 : i32
    %c0_i32_0 = arith.constant 0 : i32
    %c0_i32_1 = arith.constant 0 : i32
    return %c0_i32, %c0_i32_0 : i32, i32
  }
  func.func @transform_2(%arg0: i32) -> (i32, i32) {
    %c0_i32 = arith.constant 0 : i32
    %c0_i32_0 = arith.constant 0 : i32
    %c0_i32_1 = arith.constant 0 : i32
    return %c0_i32, %c0_i32_0 : i32, i32
  }
  func.func @transform_3(%arg0: i32) -> (i32, i32) {
    %c0_i32 = arith.constant 0 : i32
    %c0_i32_0 = arith.constant 0 : i32
    %c0_i32_1 = arith.constant 0 : i32
    return %c0_i32, %c0_i32_0 : i32, i32
  }
  func.func @transform_4(%arg0: i32) -> (i32, i32) {
    %c0_i32 = arith.constant 0 : i32
    %c0_i32_0 = arith.constant 0 : i32
    %c0_i32_1 = arith.constant 0 : i32
    return %c0_i32, %c0_i32_0 : i32, i32
  }
  func.func @transform_5(%arg0: i32) -> (i32, i32) {
    %c0_i32 = arith.constant 0 : i32
    %c0_i32_0 = arith.constant 0 : i32
    %c0_i32_1 = arith.constant 0 : i32
    return %c0_i32, %c0_i32_0 : i32, i32
  }
  func.func @transform_6(%arg0: i32) -> (i32, i32) {
    %c0_i32 = arith.constant 0 : i32
    %c0_i32_0 = arith.constant 0 : i32
    %c0_i32_1 = arith.constant 0 : i32
    return %c0_i32, %c0_i32_0 : i32, i32
  }
  func.func @transform_7(%arg0: i32) -> (i32, i32, i32) {
    %c0_i32 = arith.constant 0 : i32
    %c0_i32_0 = arith.constant 0 : i32
    %c0_i32_1 = arith.constant 0 : i32
    return %arg0, %c0_i32, %c0_i32_0 : i32, i32, i32
  }
}

</mosaic_0001>

<bundles_post_ra>
// kernel: basic_block_forward.1
= control target key start
LH: loop header
LB: loop body
LE: loop exit
PB: predicated region body
PF: predicated region fallthrough
CT: control target
= control target key end

     0   :  { %s1212_s24 = smov 0   ;;  %s1427_s0 = inlined_call_operand.vmem [shape: f32[2,8,128], index: 0, kind: input, shape index: {}]   ;;  %s1428_s1 = inlined_call_operand.vmem [shape: bf16[384,128], index: 1, kind: input, shape index: {}]   ;;  %s1429_s2 = inlined_call_operand.vmem [shape: f32[1,128], index: 2, kind: input, shape index: {}]   ;;  %s1430_s3 = inlined_call_operand.vmem [shape: f32[1,128], index: 3, kind: input, shape index: {}]   ;;  %s1431_s4 = inlined_call_operand.vmem [shape: bf16[384,128], index: 4, kind: input, shape index: {}]   ;;  %s1432_s5 = inlined_call_operand.vmem [shape: f32[1,128], index: 5, kind: input, shape index: {}]   ;;  %s1433_s6 = inlined_call_operand.vmem [shape: f32[1,128], index: 6, kind: input, shape index: {}]   ;;  %s1434_s7 = inlined_call_operand.vmem [shape: f32[2,8,128], index: 7, kind: output, shape index: {}]  }
   0x1 LB: > { %s941_s25 = sadd.s32 4294967295, %s1168_s24   ;;  %p945_p0 = scmp.ge.s32.totalorder %s1168_s24, 1  ;;  %s1168_s24 = sphi %s1212_s24, %s17_s24  }
   0x2   : > { %p236_p1 = scmp.lt.s32.totalorder %s1168_s24, 3 }
   0x4   : > { %p237_p2 = pnand %p945_p0, %p236_p1 }
   0x5   : > { %v1114_v0 = vld [vmem:[%s1428_s1 + $0x40] sm:$0xff] (!%p237_p2)   ;;  %v1170_v1 = vmov (!%p237_p2), 0.0   ;;  %v1117_v4 = vld [vmem:[%s1428_s1 + $0x48] sm:$0xff] (!%p237_p2)   ;;  %vm1171_vm0 = vmmov (!%p237_p2), 0   ;;  %v1120_v7 = vld [vmem:[%s1428_s1 + $0x50] sm:$0xff] (!%p237_p2)   ;;  %p266_p3 = scmp.lt.s32.totalorder (!%p237_p2), %s941_s25, 1 }
   0x6   : > { %240 = sbr.rel (%p237_p2) target bundleno = 499 (0x1f3), region = 48  ;;  %1064 = vmatprep.subr.bf16.mxu1 (!%p237_p2), %v1170_v1  ;;  %284 = vst [vmem:[#allocation2] sm:$0x1] (!%p237_p2), %v1170_v1  ;;  %285 = vst [vmem:[#allocation2 + $0x17] sm:$0x1] (!%p237_p2), %v1170_v1  ;;  %v1115_v2 = vld [vmem:[%s1428_s1] sm:$0xff] (!%p237_p2)   ;;  %1002 = vmatprep.subr.bf16.mxu0 (!%p237_p2), %v1114_v0 }
   0x7   : > { %589 = vst [vmem:[#allocation3] sm:$0x1] (!%p237_p2), %v1170_v1  ;;  %590 = vst [vmem:[#allocation3 + $0x17] sm:$0x1] (!%p237_p2), %v1170_v1  ;;  %v1116_v3 = vld [vmem:[%s1428_s1 + $0x80] sm:$0xff] (!%p237_p2)   ;;  %1003 = vmatpush3.bf16.msra.mxu0 (!%p237_p2), %v1115_v2  ;;  %1080 = vmatprep.mubr.msk.bf16.mxu1 (!%p237_p2), %vm1171_vm0, %v1170_v1  ;;  %v1118_v5 = vld [vmem:[%s1428_s1 + $0x8] sm:$0xff] (!%p237_p2)  }
   0x8   : > { %1065 = vmatpush3.bf16.msra.mxu1 (!%p237_p2), %v1116_v3  ;;  %1004 = vmatprep.subr.bf16.mxu0 (!%p237_p2), %v1117_v4  ;;  %v1119_v6 = vld [vmem:[%s1428_s1 + $0x88] sm:$0xff] (!%p237_p2)   ;;  %v1121_v8 = vld [vmem:[%s1428_s1 + $0x10] sm:$0xff] (!%p237_p2)   ;;  %v1123_v10 = vld [vmem:[%s1428_s1 + $0x58] sm:$0xff] (!%p237_p2)  }
   0x9   : > { %1066 = vmatprep.subr.bf16.mxu1 (!%p237_p2), %v1170_v1  ;;  %v1122_v9 = vld [vmem:[%s1428_s1 + $0x90] sm:$0xff] (!%p237_p2)   ;;  %v1124_v11 = vld [vmem:[%s1428_s1 + $0x18] sm:$0xff] (!%p237_p2)   ;;  %v1126_v13 = vld [vmem:[%s1428_s1 + $0x60] sm:$0xff] (!%p237_p2)  }
   0xa   : > { %v1125_v12 = vld [vmem:[%s1428_s1 + $0x98] sm:$0xff] (!%p237_p2)   ;;  %v1127_v14 = vld [vmem:[%s1428_s1 + $0x20] sm:$0xff] (!%p237_p2)   ;;  %v1129_v16 = vld [vmem:[%s1428_s1 + $0x68] sm:$0xff] (!%p237_p2)  }
   0xb   : > { %1005 = vmatpush3.bf16.msra.mxu0 (!%p237_p2), %v1118_v5  ;;  %v1128_v15 = vld [vmem:[%s1428_s1 + $0xa0] sm:$0xff] (!%p237_p2)   ;;  %v1130_v17 = vld [vmem:[%s1428_s1 + $0x28] sm:$0xff] (!%p237_p2)   ;;  %v1132_v19 = vld [vmem:[%s1428_s1 + $0x70] sm:$0xff] (!%p237_p2)  }
   0xc   : > { %1067 = vmatpush3.bf16.msra.mxu1 (!%p237_p2), %v1119_v6  ;;  %1006 = vmatprep.subr.bf16.mxu0 (!%p237_p2), %v1120_v7  ;;  %v1131_v18 = vld [vmem:[%s1428_s1 + $0xa8] sm:$0xff] (!%p237_p2)   ;;  %v1133_v20 = vld [vmem:[%s1428_s1 + $0x30] sm:$0xff] (!%p237_p2)   ;;  %v1135_v22 = vld [vmem:[%s1428_s1 + $0x78] sm:$0xff] (!%p237_p2)  }
   0xd   : > { %1068 = vmatprep.subr.bf16.mxu1 %v1170_v1  ;;  %s1436_s25 = smov (!%p266_p3, %s941_s25), 1  ;;  %v1134_v21 = vld [vmem:[%s1428_s1 + $0xb0] sm:$0xff]   ;;  %v1136_v24 = vld [vmem:[%s1428_s1 + $0x38] sm:$0xff]   ;;  %v1138_v29 = vld [vmem:[%s1431_s4 + $0x40] sm:$0xff]  }
   0xe   : > { %s946_s16 = sshll.u32 %s1436_s25, 3  ;;  %v1137_v28 = vld [vmem:[%s1428_s1 + $0xb8] sm:$0xff]   ;;  %v1139_v30 = vld [vmem:[%s1431_s4] sm:$0xff]   ;;  %v1141_v32 = vld [vmem:[%s1431_s4 + $0x48] sm:$0xff]  }
   0xf   : > { %1007 = vmatpush3.bf16.msra.mxu0 %v1121_v8  ;;  %s269_s27 = scalar_lea.vmem %s1427_s0, %s946_s16  ;;  %v1140_v31 = vld [vmem:[%s1431_s4 + $0x80] sm:$0xff]   ;;  %v1142_v37 = vld [vmem:[%s1431_s4 + $0x8] sm:$0xff]   ;;  %v1144_v39 = vld [vmem:[%s1431_s4 + $0x50] sm:$0xff]   ;;  %s273_s11 = scalar_lea.vmem %s1434_s7, %s946_s16 }
  0x10   : > { %1069 = vmatpush3.bf16.msra.mxu1 %v1122_v9  ;;  %1008 = vmatprep.subr.bf16.mxu0 %v1123_v10  ;;  %v1310_v23 = vld [vmem:[%s269_s27] sm:$0xff]  ;;  %v1143_v38 = vld [vmem:[%s1431_s4 + $0x88] sm:$0xff]   ;;  %v1145_v40 = vld [vmem:[%s1431_s4 + $0x10] sm:$0xff]  }
  0x11   : > { %1070 = vmatprep.subr.bf16.mxu1 %v1170_v1  ;;  %v290_v25 = vpack.c.bf16 %v1310_v23, %v1310_v23  ;;  %v278_v26 = vrot.slane %v1310_v23, 7  ;;  %v281_v27 = vrot.slane %v1310_v23, 1  ;;  %v1146_v41 = vld [vmem:[%s1431_s4 + $0x90] sm:$0xff]   ;;  %v1147_v42 = vld [vmem:[%s1431_s4 + $0x58] sm:$0xff]   ;;  %v1150_v45 = vld [vmem:[%s1431_s4 + $0x60] sm:$0xff]  }
  0x12   : > { %v1148_v43 = vld [vmem:[%s1431_s4 + $0x18] sm:$0xff]   ;;  %v1151_v46 = vld [vmem:[%s1431_s4 + $0x20] sm:$0xff]   ;;  %v1153_v48 = vld [vmem:[%s1431_s4 + $0x68] sm:$0xff]  }
  0x13   : > { %1009 = vmatpush3.bf16.msra.mxu0 %v1124_v11  ;;  %516 = vmatprep.mubr.bf16.mxu0 %v290_v25  ;;  %280 = vst [vmem:[#allocation2] sm:$0xfe] %v278_v26  ;;  %283 = vst [vmem:[#allocation2 + $0x10] sm:$0x7f] %v281_v27  ;;  %v1149_v44 = vld [vmem:[%s1431_s4 + $0x98] sm:$0xff]   ;;  %v1152_v47 = vld [vmem:[%s1431_s4 + $0xa0] sm:$0xff]  }
  0x14   : > { %1071 = vmatpush3.bf16.msra.mxu1 %v1125_v12  ;;  %1010 = vmatprep.subr.bf16.mxu0 %v1126_v13  ;;  %v1154_v49 = vld [vmem:[%s1431_s4 + $0x28] sm:$0xff]   ;;  %v1156_v51 = vld [vmem:[%s1431_s4 + $0x70] sm:$0xff]   ;;  %v1159_v54 = vld [vmem:[%s1431_s4 + $0x78] sm:$0xff]  }
  0x15   : > { %1072 = vmatprep.subr.bf16.mxu1 %v1170_v1  ;;  %v1155_v50 = vld [vmem:[%s1431_s4 + $0xa8] sm:$0xff]   ;;  %v1157_v52 = vld [vmem:[%s1431_s4 + $0x30] sm:$0xff]   ;;  %v1160_v55 = vld [vmem:[%s1431_s4 + $0x38] sm:$0xff]  }
  0x16   : > { %v1158_v53 = vld [vmem:[%s1431_s4 + $0xb0] sm:$0xff]   ;;  %v1161_v56 = vld [vmem:[%s1431_s4 + $0xb8] sm:$0xff]   ;;  %v972_v0 = vld [vmem:[%s1429_s2] ss:$0 sm:$0xff] }
  0x17   : > { %1011 = vmatpush3.bf16.msra.mxu0 %v1127_v14  ;;  %v999_v27 = vld [vmem:[%s1433_s6] ss:$0 sm:$0xff] }
  0x18   : > { %1073 = vmatpush3.bf16.msra.mxu1 %v1128_v15  ;;  %1012 = vmatprep.subr.bf16.mxu0 %v1129_v16 }
  0x19   : > { %1074 = vmatprep.subr.bf16.mxu1 %v1170_v1 }
  0x1a   : > { %v286_v33 = vld [vmem:[#allocation2] sm:$0xff]  ;;  %v288_v34 = vld [vmem:[#allocation2 + $0x10] sm:$0xff] }
  0x1b   : > { %1013 = vmatpush3.bf16.msra.mxu0 %v1130_v17  ;;  %v289_v35 = vpack.c.bf16 %v286_v33, %v286_v33  ;;  %v291_v36 = vpack.c.bf16 %v288_v34, %v288_v34 }
  0x1c   : > { %1075 = vmatpush3.bf16.msra.mxu1 %v1131_v18  ;;  %1014 = vmatprep.subr.bf16.mxu0 %v1132_v19 }
  0x1d   : > { %1076 = vmatprep.subr.bf16.mxu1 %v1170_v1 }
  0x1f   : > { %1015 = vmatpush3.bf16.msra.mxu0 %v1133_v20 }
  0x20   : > { %1077 = vmatpush3.bf16.msra.mxu1 %v1134_v21  ;;  %1016 = vmatprep.subr.bf16.mxu0 %v1135_v22  ;;  %v998_v22 = vld [vmem:[%s1432_s5] ss:$0 sm:$0xff] }
  0x21   : > { %1078 = vmatprep.subr.bf16.mxu1 %v1170_v1 }
  0x23   : > { %1017 = vmatpush3.bf16.msra.mxu0 %v1136_v24 }
  0x24   : > { %1079 = vmatpush3.bf16.msra.mxu1 %v1137_v28  ;;  %1033 = vmatprep.subr.bf16.mxu0 %v1138_v29 }
  0x25   : > { %1084 = vmatprep.subr.bf16.mxu1 %v1170_v1 }
  0x26   : > { %517 = vmatmul.mubr.bf16.vlgmr.msra.gmra.mrb[0].mxu0 %v289_v35 }
  0x27   : > { %1081 = vmatmul.mubr.bf16.vlgmr.msra.gmra.mrb[0].mxu1 %v291_v36  ;;  %1034 = vmatpush3.bf16.msra.mxu0 %v1139_v30 }
  0x28   : > { %1085 = vmatpush3.bf16.msra.mxu1 %v1140_v31  ;;  %1035 = vmatprep.subr.bf16.mxu0 %v1141_v32 }
  0x29   : > { %1086 = vmatprep.subr.bf16.mxu1 %v1170_v1  ;;  %1100 = vmatprep.mubr.msk.bf16.mxu1 %vm1171_vm0, %v1170_v1 }
  0x2b   : > { %1036 = vmatpush3.bf16.msra.mxu0 %v1142_v37 }
  0x2c   : > { %1087 = vmatpush3.bf16.msra.mxu1 %v1143_v38  ;;  %1037 = vmatprep.subr.bf16.mxu0 %v1144_v39 }
  0x2d   : > { %1088 = vmatprep.subr.bf16.mxu1 %v1170_v1 }
  0x2f   : > { %1038 = vmatpush3.bf16.msra.mxu0 %v1145_v40 }
  0x30   : > { %1089 = vmatpush3.bf16.msra.mxu1 %v1146_v41  ;;  %1039 = vmatprep.subr.bf16.mxu0 %v1147_v42 }
  0x31   : > { %1090 = vmatprep.subr.bf16.mxu1 %v1170_v1 }
  0x33   : > { %1040 = vmatpush3.bf16.msra.mxu0 %v1148_v43 }
  0x34   : > { %1091 = vmatpush3.bf16.msra.mxu1 %v1149_v44  ;;  %1041 = vmatprep.subr.bf16.mxu0 %v1150_v45 }
  0x35   : > { %1092 = vmatprep.subr.bf16.mxu1 %v1170_v1 }
  0x37   : > { %1042 = vmatpush3.bf16.msra.mxu0 %v1151_v46 }
  0x38   : > { %1093 = vmatpush3.bf16.msra.mxu1 %v1152_v47  ;;  %1043 = vmatprep.subr.bf16.mxu0 %v1153_v48 }
  0x39   : > { %1094 = vmatprep.subr.bf16.mxu1 %v1170_v1 }
  0x3b   : > { %1044 = vmatpush3.bf16.msra.mxu0 %v1154_v49 }
  0x3c   : > { %1095 = vmatpush3.bf16.msra.mxu1 %v1155_v50  ;;  %1045 = vmatprep.subr.bf16.mxu0 %v1156_v51 }
  0x3d   : > { %1096 = vmatprep.subr.bf16.mxu1 %v1170_v1 }
  0x3f   : > { %1046 = vmatpush3.bf16.msra.mxu0 %v1157_v52 }
  0x40   : > { %1097 = vmatpush3.bf16.msra.mxu1 %v1158_v53  ;;  %1047 = vmatprep.subr.bf16.mxu0 %v1159_v54 }
  0x41   : > { %1098 = vmatprep.subr.bf16.mxu1 %v1170_v1  ;;  %v973_v1 = vld [vmem:[%s1430_s3] ss:$0 sm:$0xff] }
  0x43   : > { %1048 = vmatpush3.bf16.msra.mxu0 %v1160_v55 }
  0x44   : > { %1099 = vmatpush3.bf16.msra.mxu1 %v1161_v56 }
  0xf9   : > { %v1018_v57 = vpop.f32.mrb[0].mxu0 }
  0xfa   : > { %v558_v58 = vpop.f32.mrb[0].mxu1  ;;  %v1019_v59 = vpop.f32.mrb[1].mxu0 }
  0xfb   : > { %v1082_v60 = vpop.f32.mrb[1].mxu1  ;;  %v1020_v61 = vadd.f32 %v1019_v59, %v1018_v57  ;;  %v1021_v62 = vpop.f32.mrb[2].mxu0 }
  0xfc   : > { %v561_v63 = vpop.f32.mrb[2].mxu1  ;;  %v1022_v2 = vpop.f32.mrb[3].mxu0 }
  0xfd   : > { %v1083_v3 = vpop.f32.mrb[3].mxu1  ;;  %v559_v4 = vadd.f32 %v1020_v61, %v558_v58 }
  0xff   : > { %v571_v5 = vmul.f32 %v972_v0, %v559_v4 }
 0x101   : > { %v579_v6 = vadd.f32 %v973_v1, %v571_v5 }
 0x103   : > { %v580_v7 = vmax.f32 %v579_v6, 0.0 }
 0x105   : > { %v583_v8 = vrot.slane %v580_v7, 7  ;;  %v586_v9 = vrot.slane %v580_v7, 1  ;;  %v595_v10 = vpack.c.bf16 %v580_v7, %v580_v7 }
 0x107   : > { %585 = vst [vmem:[#allocation3] sm:$0xfe] %v583_v8  ;;  %588 = vst [vmem:[#allocation3 + $0x10] sm:$0x7f] %v586_v9  ;;  %821 = vmatprep.mubr.bf16.mxu0 %v595_v10 }
 0x10e   : > { %v591_v11 = vld [vmem:[#allocation3] sm:$0xff]  ;;  %v593_v12 = vld [vmem:[#allocation3 + $0x10] sm:$0xff] }
 0x10f   : > { %v594_v13 = vpack.c.bf16 %v591_v11, %v591_v11  ;;  %v596_v14 = vpack.c.bf16 %v593_v12, %v593_v12 }
 0x111   : > { %822 = vmatmul.mubr.bf16.vlgmr.msra.gmra.mrb[4].mxu0 %v594_v13  ;;  %1101 = vmatmul.mubr.bf16.vlgmr.msra.gmra.mrb[4].mxu1 %v596_v14 }
 0x1e4   : > { %v1049_v15 = vpop.f32.mrb[4].mxu0  ;;  %v863_v16 = vpop.f32.mrb[4].mxu1 }
 0x1e5   : > { %v1050_v17 = vpop.f32.mrb[5].mxu0  ;;  %v1102_v18 = vpop.f32.mrb[5].mxu1 }
 0x1e6   : > { %v1051_v19 = vadd.f32 %v1050_v17, %v1049_v15  ;;  %v1052_v20 = vpop.f32.mrb[6].mxu0  ;;  %v866_v21 = vpop.f32.mrb[6].mxu1 }
 0x1e7   : > { %v1053_v24 = vpop.f32.mrb[7].mxu0  ;;  %v1103_v25 = vpop.f32.mrb[7].mxu1 }
 0x1e8   : > { %v864_v26 = vadd.f32 %v1051_v19, %v863_v16 }
 0x1ea   : > { %v876_v28 = vmul.f32 %v998_v22, %v864_v26 }
 0x1ec   : > { %v884_v29 = vadd.f32 %v999_v27, %v876_v28 }
 0x1ee   : > { %v885_v30 = vadd.f32 %v884_v29, %v1310_v23 }
 0x1f0   : > { %v886_v31 = vmax.f32 %v885_v30, 0.0 }
 0x1f2   : > { %887 = vst [vmem:[%s273_s11] sm:$0xff] %v886_v31 }
 0x1f3 PF: > { %s17_s24 = sadd.s32 1, %s1168_s24  }
 0x1f4   : > { %p14_p4 = scmp.ge.s32.totalorder %s17_s24, 4  }
 0x1f6   :  { %16 = sbr.rel (!%p14_p4) target bundleno = 1 (0x1), region = 78 }

</bundles_post_ra>
